<compile_context>
chip_gen: v6e
topology: v6e:2x2x1
jax: 0.10.0
libtpu: 0.0.40
codegen_flags: <defaults>
</compile_context>

<pallas_src>
import functools
import math

import jax
import jax.numpy as jnp
from jax.experimental import pallas as pl
from jax.experimental.pallas import tpu as pltpu

_LN_EPS = 1e-6                      # nn.LayerNorm(..., eps=1e-06) in the module
_VMEM_LIMIT = 64 * 1024 * 1024      # re-derive for v7x (64 MiB physical VMEM)


# --------------------------------------------------------------------------
# in-kernel helpers
# --------------------------------------------------------------------------
def _layernorm(x, gamma, beta, eps=_LN_EPS):
    """Row-wise LayerNorm in f32; gamma/beta are (1, E) row vectors."""
    mu = jnp.mean(x, axis=-1, keepdims=True)
    xc = x - mu
    var = jnp.mean(xc * xc, axis=-1, keepdims=True)
    return xc * jax.lax.rsqrt(var + eps) * gamma + beta


# --------------------------------------------------------------------------
# kernels
# --------------------------------------------------------------------------
def _qkv_kernel(x_ref, g_ref, b_ref, wqkv_ref, bqkv_ref, qkv_ref):
    """LN1 + fused QKV projection on a [TN, E] row tile."""
    x = x_ref[...]                                          # [TN, E] f32
    xn = _layernorm(x, g_ref[...], b_ref[...])              # f32
    acc = jnp.dot(xn.astype(jnp.bfloat16), wqkv_ref[...],   # bf16 x bf16 -> f32
                  preferred_element_type=jnp.float32)
    qkv_ref[...] = (acc + bqkv_ref[...]).astype(jnp.bfloat16)


def _attn_kernel(q_ref, k_ref, v_ref, probs_ref, ctx_ref, *, scale):
    """One (batch, head) attention step: scores, softmax (f32), probs, context."""
    q = q_ref[0, 0]                                         # [S, Dh] bf16
    k = k_ref[0, 0]
    v = v_ref[0, 0]
    # contract last dims directly (no explicit k.T / XLU transpose)
    s = jnp.einsum('qd,kd->qk', q, k,
                   preferred_element_type=jnp.float32) * scale
    s = s - jnp.max(s, axis=-1, keepdims=True)
    e = jnp.exp(s)
    p = e / jnp.sum(e, axis=-1, keepdims=True)              # exact softmax, f32
    probs_ref[0, 0] = p                                     # module output (vis=True)
    # attn_dropout p=0.0 -> identity
    ctx = jnp.dot(p.astype(jnp.bfloat16), v,
                  preferred_element_type=jnp.float32)
    ctx_ref[0, 0] = ctx.astype(jnp.bfloat16)


def _post_kernel(x_ref, ctx_ref, wo_ref, bo_ref, g2_ref, b2_ref,
                 w1_ref, b1_ref, w2_ref, b2m_ref, out_ref):
    """Output projection + residual + LN2 + MLP(GELU) + residual on a row tile."""
    x = x_ref[...]                                          # [TN, E] f32
    attn_out = jnp.dot(ctx_ref[...], wo_ref[...],
                       preferred_element_type=jnp.float32) + bo_ref[...]
    # proj_dropout p=0.0 -> identity
    x1 = x + attn_out                                       # residual 1 (f32)

    x1n = _layernorm(x1, g2_ref[...], b2_ref[...])
    h = jnp.dot(x1n.astype(jnp.bfloat16), w1_ref[...],
                preferred_element_type=jnp.float32) + b1_ref[...]
    # exact (erf-based) GELU, matching torch.nn.functional.gelu default
    h = 0.5 * h * (1.0 + jax.lax.erf(h * (1.0 / math.sqrt(2.0))))
    # TODO(synk): Dropout(p=0.1) treated as eval-mode identity.
    h2 = jnp.dot(h.astype(jnp.bfloat16), w2_ref[...],
                 preferred_element_type=jnp.float32) + b2m_ref[...]
    out_ref[...] = x1 + h2                                  # residual 2 (f32)


def _ln_kernel(x_ref, g_ref, b_ref, out_ref):
    out_ref[...] = _layernorm(x_ref[...], g_ref[...], b_ref[...])


# --------------------------------------------------------------------------
# pallas_call wrappers
# --------------------------------------------------------------------------
def _row_tile(n):
    """Largest tile (multiple of 8) dividing n, biased toward MXU-filling sizes."""
    for t in (512, 256, 128, 64, 32, 16, 8):
        if n % t == 0:
            return t
    return n                                                # full extent fallback


def _const_spec(shape):
    """Parameter replicated across the grid (constant block index)."""
    ndim = len(shape)
    return pl.BlockSpec(shape, lambda *_: (0,) * ndim)


def _qkv_proj(x2d, ln_g, ln_b, wqkv, bqkv):
    N, E = x2d.shape
    E3 = wqkv.shape[1]
    tn = _row_tile(N)
    return pl.pallas_call(
        _qkv_kernel,
        grid=(N // tn,),
        in_specs=[
            pl.BlockSpec((tn, E), lambda i: (i, 0)),
            _const_spec(ln_g.shape), _const_spec(ln_b.shape),
            _const_spec(wqkv.shape), _const_spec(bqkv.shape),
        ],
        out_specs=pl.BlockSpec((tn, E3), lambda i: (i, 0)),
        out_shape=jax.ShapeDtypeStruct((N, E3), jnp.bfloat16),
        compiler_params=pltpu.CompilerParams(
            dimension_semantics=("parallel",),
            vmem_limit_bytes=_VMEM_LIMIT),
    )(x2d, ln_g, ln_b, wqkv, bqkv)


def _attention(q, k, v):
    B, H, S, Dh = q.shape
    scale = 1.0 / math.sqrt(Dh)
    kernel = functools.partial(_attn_kernel, scale=scale)
    qkv_spec = pl.BlockSpec((1, 1, S, Dh), lambda b, h: (b, h, 0, 0))
    return pl.pallas_call(
        kernel,
        grid=(B, H),
        in_specs=[qkv_spec, qkv_spec, qkv_spec],
        out_specs=(
            pl.BlockSpec((1, 1, S, S), lambda b, h: (b, h, 0, 0)),
            pl.BlockSpec((1, 1, S, Dh), lambda b, h: (b, h, 0, 0)),
        ),
        out_shape=(
            jax.ShapeDtypeStruct((B, H, S, S), jnp.float32),
            jax.ShapeDtypeStruct((B, H, S, Dh), jnp.bfloat16),
        ),
        compiler_params=pltpu.CompilerParams(
            dimension_semantics=("parallel", "parallel"),
            vmem_limit_bytes=_VMEM_LIMIT),
    )(q, k, v)


def _attn_out_mlp(x2d, ctx2d, p):
    N, E = x2d.shape
    tn = _row_tile(N)
    return pl.pallas_call(
        _post_kernel,
        grid=(N // tn,),
        in_specs=[
            pl.BlockSpec((tn, E), lambda i: (i, 0)),        # x (residual source)
            pl.BlockSpec((tn, E), lambda i: (i, 0)),        # attention context
            _const_spec(p["wo"].shape), _const_spec(p["bo"].shape),
            _const_spec(p["ln2_g"].shape), _const_spec(p["ln2_b"].shape),
            _const_spec(p["w1"].shape), _const_spec(p["b1"].shape),
            _const_spec(p["w2"].shape), _const_spec(p["b2"].shape),
        ],
        out_specs=pl.BlockSpec((tn, E), lambda i: (i, 0)),
        out_shape=jax.ShapeDtypeStruct((N, E), jnp.float32),
        compiler_params=pltpu.CompilerParams(
            dimension_semantics=("parallel",),
            vmem_limit_bytes=_VMEM_LIMIT),
    )(x2d, ctx2d,
      p["wo"].astype(jnp.bfloat16), p["bo"],
      p["ln2_g"], p["ln2_b"],
      p["w1"].astype(jnp.bfloat16), p["b1"],
      p["w2"].astype(jnp.bfloat16), p["b2"])


def _final_layernorm(x2d, g, b):
    N, E = x2d.shape
    tn = _row_tile(N)
    return pl.pallas_call(
        _ln_kernel,
        grid=(N // tn,),
        in_specs=[pl.BlockSpec((tn, E), lambda i: (i, 0)),
                  _const_spec(g.shape), _const_spec(b.shape)],
        out_specs=pl.BlockSpec((tn, E), lambda i: (i, 0)),
        out_shape=jax.ShapeDtypeStruct((N, E), jnp.float32),
        compiler_params=pltpu.CompilerParams(
            dimension_semantics=("parallel",),
            vmem_limit_bytes=_VMEM_LIMIT),
    )(x2d, g, b)


# --------------------------------------------------------------------------
# Block / Encoder forward
# --------------------------------------------------------------------------
def block_forward(x, p, num_heads):
    """One transformer Block. x: [B,S,E] f32 -> (out [B,S,E] f32, probs [B,H,S,S] f32)."""
    B, S, E = x.shape
    H = num_heads
    Dh = E // H
    N = B * S
    x2d = x.reshape(N, E)

    # fused QKV weights ([in, out] layout), cast to bf16 for the MXU
    wqkv = jnp.concatenate([p["wq"], p["wk"], p["wv"]], axis=1).astype(jnp.bfloat16)
    bqkv = jnp.concatenate([p["bq"], p["bk"], p["bv"]], axis=1)          # f32 [1, 3E]

    qkv = _qkv_proj(x2d, p["ln1_g"], p["ln1_b"], wqkv, bqkv)             # [N, 3E] bf16

    # wrapper-side layout plumbing: [N,3E] -> [3, B, H, S, Dh]
    qkv = qkv.reshape(B, S, 3, H, Dh).transpose(2, 0, 3, 1, 4)
    q, k, v = qkv[0], qkv[1], qkv[2]

    probs, ctx = _attention(q, k, v)                                     # f32 / bf16
    ctx2d = ctx.transpose(0, 2, 1, 3).reshape(N, E)                      # token-major

    out2d = _attn_out_mlp(x2d, ctx2d, p)                                 # [N, E] f32
    return out2d.reshape(B, S, E), probs


def encoder_forward(x, params, num_heads):
    """Encoder.forward: stack of Blocks + final LayerNorm, vis=True."""
    layer_params, enc_g, enc_b = params
    attn_weights = []
    for p in layer_params:
        x, w = block_forward(x, p, num_heads)
        attn_weights.append(w)
    B, S, E = x.shape
    encoded = _final_layernorm(x.reshape(B * S, E), enc_g, enc_b).reshape(B, S, E)
    return encoded, attn_weights


# --------------------------------------------------------------------------
# parameter init (mirrors the module's shapes; Linear weights stored [in, out])
# --------------------------------------------------------------------------
def init_params(key, emb_size, num_layers):
    E = emb_size

    def linear(k, fan_in, fan_out):
        kw, kb = jax.random.split(k)
        lim = 1.0 / math.sqrt(fan_in)
        w = jax.random.uniform(kw, (fan_in, fan_out), jnp.float32, -lim, lim)
        b = jax.random.uniform(kb, (1, fan_out), jnp.float32, -lim, lim)
        return w, b

    def xavier(k, fan_in, fan_out):
        lim = math.sqrt(6.0 / (fan_in + fan_out))
        return jax.random.uniform(k, (fan_in, fan_out), jnp.float32, -lim, lim)

    keys = jax.random.split(key, num_layers)
    layers = []
    for lk in keys:
        ks = jax.random.split(lk, 8)
        wq, bq = linear(ks[0], E, E)
        wk, bk = linear(ks[1], E, E)
        wv, bv = linear(ks[2], E, E)
        wo, bo = linear(ks[3], E, E)
        w1 = xavier(ks[4], E, 4 * E)
        b1 = 1e-6 * jax.random.normal(ks[5], (1, 4 * E), jnp.float32)
        w2 = xavier(ks[6], 4 * E, E)
        b2 = 1e-6 * jax.random.normal(ks[7], (1, E), jnp.float32)
        layers.append(dict(
            ln1_g=jnp.ones((1, E), jnp.float32), ln1_b=jnp.zeros((1, E), jnp.float32),
            ln2_g=jnp.ones((1, E), jnp.float32), ln2_b=jnp.zeros((1, E), jnp.float32),
            wq=wq, bq=bq, wk=wk, bk=bk, wv=wv, bv=bv, wo=wo, bo=bo,
            w1=w1, b1=b1, w2=w2, b2=b2))
    enc_g = jnp.ones((1, E), jnp.float32)
    enc_b = jnp.zeros((1, E), jnp.float32)
    return layers, enc_g, enc_b


if __name__ == "__main__":
    B, S, E, H, L = 2, 8, 32, 4, 2
    key = jax.random.PRNGKey(0)
    kx, kp = jax.random.split(key)
    x = jax.random.normal(kx, (B, S, E), jnp.float32)
    params = init_params(kp, E, L)

    run = jax.jit(functools.partial(encoder_forward, num_heads=H))
    encoded, attn_weights = run(x, params)

    jax.block_until_ready(encoded)
    for w in attn_weights:
        jax.block_until_ready(w)

    assert encoded.shape == (B, S, E)
    assert len(attn_weights) == L
    assert all(w.shape == (B, H, S, S) for w in attn_weights)
    print("KERNEL_OK")
</pallas_src>

<mosaic_0001>
module attributes {stable_mosaic.version = 11 : i64} {
  func.func @_qkv_kernel(%arg0: i32, %arg1: memref<16x32xf32, #tpu.memory_space<vmem>>, %arg2: memref<1x32xf32, #tpu.memory_space<vmem>>, %arg3: memref<1x32xf32, #tpu.memory_space<vmem>>, %arg4: memref<32x96xbf16, #tpu.memory_space<vmem>>, %arg5: memref<1x96xf32, #tpu.memory_space<vmem>>, %arg6: memref<16x96xbf16, #tpu.memory_space<vmem>>) attributes {dimension_semantics = [#tpu.dimension_semantics<parallel>], iteration_bounds = array<i64: 1>, scalar_prefetch = 0 : i64, scratch_operands = 0 : i64, tpu.core_type = #tpu.core_type<tc>, window_params = [{transform_indices = @transform_0, window_bounds = array<i64: 16, 32>}, {pipeline_mode = #tpu.pipeline_mode<synchronous>, transform_indices = @transform_1, window_bounds = array<i64: 1, 32>}, {pipeline_mode = #tpu.pipeline_mode<synchronous>, transform_indices = @transform_2, window_bounds = array<i64: 1, 32>}, {pipeline_mode = #tpu.pipeline_mode<synchronous>, transform_indices = @transform_3, window_bounds = array<i64: 32, 96>}, {pipeline_mode = #tpu.pipeline_mode<synchronous>, transform_indices = @transform_4, window_bounds = array<i64: 1, 96>}, {transform_indices = @transform_5, window_bounds = array<i64: 16, 96>}]} {
    %c0 = arith.constant 0 : index
    %c0_0 = arith.constant 0 : index
    %0 = vector.load %arg1[%c0, %c0_0] : memref<16x32xf32, #tpu.memory_space<vmem>>, vector<16x32xf32>
    %c0_1 = arith.constant 0 : index
    %c0_2 = arith.constant 0 : index
    %1 = vector.load %arg2[%c0_1, %c0_2] : memref<1x32xf32, #tpu.memory_space<vmem>>, vector<1x32xf32>
    %c0_3 = arith.constant 0 : index
    %c0_4 = arith.constant 0 : index
    %2 = vector.load %arg3[%c0_3, %c0_4] : memref<1x32xf32, #tpu.memory_space<vmem>>, vector<1x32xf32>
    %cst = arith.constant dense<0.000000e+00> : vector<16xf32>
    %3 = vector.multi_reduction <add>, %0, %cst [1] : vector<16x32xf32> to vector<16xf32>
    %4 = vector.shape_cast %3 : vector<16xf32> to vector<16x1xf32>
    %cst_5 = arith.constant 3.200000e+01 : f32
    %5 = vector.broadcast %cst_5 : f32 to vector<16x1xf32>
    %6 = arith.divf %4, %5 : vector<16x1xf32>
    %7 = vector.broadcast %6 : vector<16x1xf32> to vector<16x32xf32>
    %8 = arith.subf %0, %7 : vector<16x32xf32>
    %9 = arith.mulf %8, %8 : vector<16x32xf32>
    %cst_6 = arith.constant dense<0.000000e+00> : vector<16xf32>
    %10 = vector.multi_reduction <add>, %9, %cst_6 [1] : vector<16x32xf32> to vector<16xf32>
    %11 = vector.shape_cast %10 : vector<16xf32> to vector<16x1xf32>
    %cst_7 = arith.constant 3.200000e+01 : f32
    %12 = vector.broadcast %cst_7 : f32 to vector<16x1xf32>
    %13 = arith.divf %11, %12 : vector<16x1xf32>
    %cst_8 = arith.constant 9.99999997E-7 : f32
    %14 = vector.broadcast %cst_8 : f32 to vector<16x1xf32>
    %15 = arith.addf %13, %14 : vector<16x1xf32>
    %16 = math.rsqrt %15 : vector<16x1xf32>
    %17 = vector.broadcast %16 : vector<16x1xf32> to vector<16x32xf32>
    %18 = arith.mulf %8, %17 : vector<16x32xf32>
    %19 = vector.broadcast %1 : vector<1x32xf32> to vector<16x32xf32>
    %20 = arith.mulf %18, %19 : vector<16x32xf32>
    %21 = vector.broadcast %2 : vector<1x32xf32> to vector<16x32xf32>
    %22 = arith.addf %20, %21 : vector<16x32xf32>
    %23 = arith.truncf %22 : vector<16x32xf32> to vector<16x32xbf16>
    %c0_9 = arith.constant 0 : index
    %c0_10 = arith.constant 0 : index
    %24 = vector.load %arg4[%c0_9, %c0_10] : memref<32x96xbf16, #tpu.memory_space<vmem>>, vector<32x96xbf16>
    %cst_11 = arith.constant dense<0.000000e+00> : vector<16x96xf32>
    %25 = tpu.matmul %23, %24, %cst_11 {dimension_numbers = #tpu.dot_dimension_numbers<[1], [0], [0], [1], [0, 0, 1, 1], [], []>} : vector<16x32xbf16>, vector<32x96xbf16>, vector<16x96xf32> -> vector<16x96xf32>
    %c0_12 = arith.constant 0 : index
    %c0_13 = arith.constant 0 : index
    %26 = vector.load %arg5[%c0_12, %c0_13] : memref<1x96xf32, #tpu.memory_space<vmem>>, vector<1x96xf32>
    %27 = vector.broadcast %26 : vector<1x96xf32> to vector<16x96xf32>
    %28 = arith.addf %25, %27 : vector<16x96xf32>
    %29 = arith.truncf %28 : vector<16x96xf32> to vector<16x96xbf16>
    %c0_14 = arith.constant 0 : index
    %c0_15 = arith.constant 0 : index
    %30 = vector.load %arg6[%c0_14, %c0_15] : memref<16x96xbf16, #tpu.memory_space<vmem>>, vector<16x96xbf16>
    tpu.vector_store %arg6[%c0_14, %c0_15], %29 {strides = array<i32>} : memref<16x96xbf16, #tpu.memory_space<vmem>>, vector<16x96xbf16>,
    return
  }
  func.func @transform_0(%arg0: i32) -> (i32, i32) {
    %c0_i32 = arith.constant 0 : i32
    %c0_i32_0 = arith.constant 0 : i32
    return %arg0, %c0_i32 : i32, i32
  }
  func.func @transform_1(%arg0: i32) -> (i32, i32) {
    %c0_i32 = arith.constant 0 : i32
    %c0_i32_0 = arith.constant 0 : i32
    %c0_i32_1 = arith.constant 0 : i32
    return %c0_i32, %c0_i32_0 : i32, i32
  }
  func.func @transform_2(%arg0: i32) -> (i32, i32) {
    %c0_i32 = arith.constant 0 : i32
    %c0_i32_0 = arith.constant 0 : i32
    %c0_i32_1 = arith.constant 0 : i32
    return %c0_i32, %c0_i32_0 : i32, i32
  }
  func.func @transform_3(%arg0: i32) -> (i32, i32) {
    %c0_i32 = arith.constant 0 : i32
    %c0_i32_0 = arith.constant 0 : i32
    %c0_i32_1 = arith.constant 0 : i32
    return %c0_i32, %c0_i32_0 : i32, i32
  }
  func.func @transform_4(%arg0: i32) -> (i32, i32) {
    %c0_i32 = arith.constant 0 : i32
    %c0_i32_0 = arith.constant 0 : i32
    %c0_i32_1 = arith.constant 0 : i32
    return %c0_i32, %c0_i32_0 : i32, i32
  }
  func.func @transform_5(%arg0: i32) -> (i32, i32) {
    %c0_i32 = arith.constant 0 : i32
    %c0_i32_0 = arith.constant 0 : i32
    return %arg0, %c0_i32 : i32, i32
  }
}

module attributes {stable_mosaic.version = 11 : i64} {
  func.func @_attn_kernel(%arg0: i32, %arg1: i32, %arg2: memref<1x1x8x8xbf16, #tpu.memory_space<vmem>>, %arg3: memref<1x1x8x8xbf16, #tpu.memory_space<vmem>>, %arg4: memref<1x1x8x8xbf16, #tpu.memory_space<vmem>>, %arg5: memref<1x1x8x8xf32, #tpu.memory_space<vmem>>, %arg6: memref<1x1x8x8xbf16, #tpu.memory_space<vmem>>) attributes {dimension_semantics = [#tpu.dimension_semantics<parallel>, #tpu.dimension_semantics<parallel>], iteration_bounds = array<i64: 2, 4>, scalar_prefetch = 0 : i64, scratch_operands = 0 : i64, tpu.core_type = #tpu.core_type<tc>, window_params = [{transform_indices = @transform_0, window_bounds = array<i64: 1, 1, 8, 8>}, {transform_indices = @transform_1, window_bounds = array<i64: 1, 1, 8, 8>}, {transform_indices = @transform_2, window_bounds = array<i64: 1, 1, 8, 8>}, {transform_indices = @transform_3, window_bounds = array<i64: 1, 1, 8, 8>}, {transform_indices = @transform_4, window_bounds = array<i64: 1, 1, 8, 8>}]} {
    %c0 = arith.constant 0 : index
    %c0_0 = arith.constant 0 : index
    %c0_1 = arith.constant 0 : index
    %c0_2 = arith.constant 0 : index
    %0 = vector.load %arg2[%c0, %c0_0, %c0_1, %c0_2] : memref<1x1x8x8xbf16, #tpu.memory_space<vmem>>, vector<1x1x8x8xbf16>
    %1 = vector.shape_cast %0 : vector<1x1x8x8xbf16> to vector<8x8xbf16>
    %c0_3 = arith.constant 0 : index
    %c0_4 = arith.constant 0 : index
    %c0_5 = arith.constant 0 : index
    %c0_6 = arith.constant 0 : index
    %2 = vector.load %arg3[%c0_3, %c0_4, %c0_5, %c0_6] : memref<1x1x8x8xbf16, #tpu.memory_space<vmem>>, vector<1x1x8x8xbf16>
    %3 = vector.shape_cast %2 : vector<1x1x8x8xbf16> to vector<8x8xbf16>
    %c0_7 = arith.constant 0 : index
    %c0_8 = arith.constant 0 : index
    %c0_9 = arith.constant 0 : index
    %c0_10 = arith.constant 0 : index
    %4 = vector.load %arg4[%c0_7, %c0_8, %c0_9, %c0_10] : memref<1x1x8x8xbf16, #tpu.memory_space<vmem>>, vector<1x1x8x8xbf16>
    %5 = vector.shape_cast %4 : vector<1x1x8x8xbf16> to vector<8x8xbf16>
    "tpu.trace_start"() <{level = 10 : i32, message = "qd,kd->qk"}> : () -> ()
    %cst = arith.constant dense<0.000000e+00> : vector<8x8xf32>
    %6 = tpu.matmul %1, %3, %cst {dimension_numbers = #tpu.dot_dimension_numbers<[1], [1], [0], [0], [0, 0, 1, 0], [], []>} : vector<8x8xbf16>, vector<8x8xbf16>, vector<8x8xf32> -> vector<8x8xf32>
    "tpu.trace_stop"() : () -> ()
    %cst_11 = arith.constant 0.353553385 : f32
    %7 = vector.broadcast %cst_11 : f32 to vector<8x8xf32>
    %8 = arith.mulf %6, %7 : vector<8x8xf32>
    %cst_12 = arith.constant dense<0xFF800000> : vector<8xf32>
    %9 = vector.multi_reduction <maximumf>, %8, %cst_12 [1] : vector<8x8xf32> to vector<8xf32>
    %10 = vector.shape_cast %9 : vector<8xf32> to vector<8x1xf32>
    %11 = vector.broadcast %10 : vector<8x1xf32> to vector<8x8xf32>
    %12 = arith.subf %8, %11 : vector<8x8xf32>
    %13 = math.exp %12 : vector<8x8xf32>
    %cst_13 = arith.constant dense<0.000000e+00> : vector<8xf32>
    %14 = vector.multi_reduction <add>, %13, %cst_13 [1] : vector<8x8xf32> to vector<8xf32>
    %15 = vector.shape_cast %14 : vector<8xf32> to vector<8x1xf32>
    %16 = vector.broadcast %15 : vector<8x1xf32> to vector<8x8xf32>
    %17 = arith.divf %13, %16 : vector<8x8xf32>
    %c0_14 = arith.constant 0 : index
    %c0_15 = arith.constant 0 : index
    %c0_16 = arith.constant 0 : index
    %c0_17 = arith.constant 0 : index
    %18 = vector.load %arg5[%c0_14, %c0_15, %c0_16, %c0_17] : memref<1x1x8x8xf32, #tpu.memory_space<vmem>>, vector<1x1x8x8xf32>
    %19 = vector.shape_cast %18 : vector<1x1x8x8xf32> to vector<8x8xf32>
    %20 = vector.shape_cast %17 : vector<8x8xf32> to vector<1x1x8x8xf32>
    tpu.vector_store %arg5[%c0_14, %c0_15, %c0_16, %c0_17], %20 {strides = array<i32>} : memref<1x1x8x8xf32, #tpu.memory_space<vmem>>, vector<1x1x8x8xf32>,
    %21 = arith.truncf %17 : vector<8x8xf32> to vector<8x8xbf16>
    %cst_18 = arith.constant dense<0.000000e+00> : vector<8x8xf32>
    %22 = tpu.matmul %21, %5, %cst_18 {dimension_numbers = #tpu.dot_dimension_numbers<[1], [0], [0], [1], [0, 0, 1, 1], [], []>} : vector<8x8xbf16>, vector<8x8xbf16>, vector<8x8xf32> -> vector<8x8xf32>
    %23 = arith.truncf %22 : vector<8x8xf32> to vector<8x8xbf16>
    %c0_19 = arith.constant 0 : index
    %c0_20 = arith.constant 0 : index
    %c0_21 = arith.constant 0 : index
    %c0_22 = arith.constant 0 : index
    %24 = vector.load %arg6[%c0_19, %c0_20, %c0_21, %c0_22] : memref<1x1x8x8xbf16, #tpu.memory_space<vmem>>, vector<1x1x8x8xbf16>
    %25 = vector.shape_cast %24 : vector<1x1x8x8xbf16> to vector<8x8xbf16>
    %26 = vector.shape_cast %23 : vector<8x8xbf16> to vector<1x1x8x8xbf16>
    tpu.vector_store %arg6[%c0_19, %c0_20, %c0_21, %c0_22], %26 {strides = array<i32>} : memref<1x1x8x8xbf16, #tpu.memory_space<vmem>>, vector<1x1x8x8xbf16>,
    return
  }
  func.func @transform_0(%arg0: i32, %arg1: i32) -> (i32, i32, i32, i32) {
    %c0_i32 = arith.constant 0 : i32
    %c0_i32_0 = arith.constant 0 : i32
    %c0_i32_1 = arith.constant 0 : i32
    return %arg0, %arg1, %c0_i32, %c0_i32_0 : i32, i32, i32, i32
  }
  func.func @transform_1(%arg0: i32, %arg1: i32) -> (i32, i32, i32, i32) {
    %c0_i32 = arith.constant 0 : i32
    %c0_i32_0 = arith.constant 0 : i32
    %c0_i32_1 = arith.constant 0 : i32
    return %arg0, %arg1, %c0_i32, %c0_i32_0 : i32, i32, i32, i32
  }
  func.func @transform_2(%arg0: i32, %arg1: i32) -> (i32, i32, i32, i32) {
    %c0_i32 = arith.constant 0 : i32
    %c0_i32_0 = arith.constant 0 : i32
    %c0_i32_1 = arith.constant 0 : i32
    return %arg0, %arg1, %c0_i32, %c0_i32_0 : i32, i32, i32, i32
  }
  func.func @transform_3(%arg0: i32, %arg1: i32) -> (i32, i32, i32, i32) {
    %c0_i32 = arith.constant 0 : i32
    %c0_i32_0 = arith.constant 0 : i32
    %c0_i32_1 = arith.constant 0 : i32
    return %arg0, %arg1, %c0_i32, %c0_i32_0 : i32, i32, i32, i32
  }
  func.func @transform_4(%arg0: i32, %arg1: i32) -> (i32, i32, i32, i32) {
    %c0_i32 = arith.constant 0 : i32
    %c0_i32_0 = arith.constant 0 : i32
    %c0_i32_1 = arith.constant 0 : i32
    return %arg0, %arg1, %c0_i32, %c0_i32_0 : i32, i32, i32, i32
  }
}

module attributes {stable_mosaic.version = 11 : i64} {
  func.func @_post_kernel(%arg0: i32, %arg1: memref<16x32xf32, #tpu.memory_space<vmem>>, %arg2: memref<16x32xbf16, #tpu.memory_space<vmem>>, %arg3: memref<32x32xbf16, #tpu.memory_space<vmem>>, %arg4: memref<1x32xf32, #tpu.memory_space<vmem>>, %arg5: memref<1x32xf32, #tpu.memory_space<vmem>>, %arg6: memref<1x32xf32, #tpu.memory_space<vmem>>, %arg7: memref<32x128xbf16, #tpu.memory_space<vmem>>, %arg8: memref<1x128xf32, #tpu.memory_space<vmem>>, %arg9: memref<128x32xbf16, #tpu.memory_space<vmem>>, %arg10: memref<1x32xf32, #tpu.memory_space<vmem>>, %arg11: memref<16x32xf32, #tpu.memory_space<vmem>>) attributes {dimension_semantics = [#tpu.dimension_semantics<parallel>], iteration_bounds = array<i64: 1>, scalar_prefetch = 0 : i64, scratch_operands = 0 : i64, tpu.core_type = #tpu.core_type<tc>, window_params = [{transform_indices = @transform_0, window_bounds = array<i64: 16, 32>}, {transform_indices = @transform_1, window_bounds = array<i64: 16, 32>}, {pipeline_mode = #tpu.pipeline_mode<synchronous>, transform_indices = @transform_2, window_bounds = array<i64: 32, 32>}, {pipeline_mode = #tpu.pipeline_mode<synchronous>, transform_indices = @transform_3, window_bounds = array<i64: 1, 32>}, {pipeline_mode = #tpu.pipeline_mode<synchronous>, transform_indices = @transform_4, window_bounds = array<i64: 1, 32>}, {pipeline_mode = #tpu.pipeline_mode<synchronous>, transform_indices = @transform_5, window_bounds = array<i64: 1, 32>}, {pipeline_mode = #tpu.pipeline_mode<synchronous>, transform_indices = @transform_6, window_bounds = array<i64: 32, 128>}, {pipeline_mode = #tpu.pipeline_mode<synchronous>, transform_indices = @transform_7, window_bounds = array<i64: 1, 128>}, {pipeline_mode = #tpu.pipeline_mode<synchronous>, transform_indices = @transform_8, window_bounds = array<i64: 128, 32>}, {pipeline_mode = #tpu.pipeline_mode<synchronous>, transform_indices = @transform_9, window_bounds = array<i64: 1, 32>}, {transform_indices = @transform_10, window_bounds = array<i64: 16, 32>}]} {
    %c0 = arith.constant 0 : index
    %c0_0 = arith.constant 0 : index
    %0 = vector.load %arg1[%c0, %c0_0] : memref<16x32xf32, #tpu.memory_space<vmem>>, vector<16x32xf32>
    %c0_1 = arith.constant 0 : index
    %c0_2 = arith.constant 0 : index
    %1 = vector.load %arg2[%c0_1, %c0_2] : memref<16x32xbf16, #tpu.memory_space<vmem>>, vector<16x32xbf16>
    %c0_3 = arith.constant 0 : index
    %c0_4 = arith.constant 0 : index
    %2 = vector.load %arg3[%c0_3, %c0_4] : memref<32x32xbf16, #tpu.memory_space<vmem>>, vector<32x32xbf16>
    %cst = arith.constant dense<0.000000e+00> : vector<16x32xf32>
    %3 = tpu.matmul %1, %2, %cst {dimension_numbers = #tpu.dot_dimension_numbers<[1], [0], [0], [1], [0, 0, 1, 1], [], []>} : vector<16x32xbf16>, vector<32x32xbf16>, vector<16x32xf32> -> vector<16x32xf32>
    %c0_5 = arith.constant 0 : index
    %c0_6 = arith.constant 0 : index
    %4 = vector.load %arg4[%c0_5, %c0_6] : memref<1x32xf32, #tpu.memory_space<vmem>>, vector<1x32xf32>
    %5 = vector.broadcast %4 : vector<1x32xf32> to vector<16x32xf32>
    %6 = arith.addf %3, %5 : vector<16x32xf32>
    %7 = arith.addf %0, %6 : vector<16x32xf32>
    %c0_7 = arith.constant 0 : index
    %c0_8 = arith.constant 0 : index
    %8 = vector.load %arg5[%c0_7, %c0_8] : memref<1x32xf32, #tpu.memory_space<vmem>>, vector<1x32xf32>
    %c0_9 = arith.constant 0 : index
    %c0_10 = arith.constant 0 : index
    %9 = vector.load %arg6[%c0_9, %c0_10] : memref<1x32xf32, #tpu.memory_space<vmem>>, vector<1x32xf32>
    %cst_11 = arith.constant dense<0.000000e+00> : vector<16xf32>
    %10 = vector.multi_reduction <add>, %7, %cst_11 [1] : vector<16x32xf32> to vector<16xf32>
    %11 = vector.shape_cast %10 : vector<16xf32> to vector<16x1xf32>
    %cst_12 = arith.constant 3.200000e+01 : f32
    %12 = vector.broadcast %cst_12 : f32 to vector<16x1xf32>
    %13 = arith.divf %11, %12 : vector<16x1xf32>
    %14 = vector.broadcast %13 : vector<16x1xf32> to vector<16x32xf32>
    %15 = arith.subf %7, %14 : vector<16x32xf32>
    %16 = arith.mulf %15, %15 : vector<16x32xf32>
    %cst_13 = arith.constant dense<0.000000e+00> : vector<16xf32>
    %17 = vector.multi_reduction <add>, %16, %cst_13 [1] : vector<16x32xf32> to vector<16xf32>
    %18 = vector.shape_cast %17 : vector<16xf32> to vector<16x1xf32>
    %cst_14 = arith.constant 3.200000e+01 : f32
    %19 = vector.broadcast %cst_14 : f32 to vector<16x1xf32>
    %20 = arith.divf %18, %19 : vector<16x1xf32>
    %cst_15 = arith.constant 9.99999997E-7 : f32
    %21 = vector.broadcast %cst_15 : f32 to vector<16x1xf32>
    %22 = arith.addf %20, %21 : vector<16x1xf32>
    %23 = math.rsqrt %22 : vector<16x1xf32>
    %24 = vector.broadcast %23 : vector<16x1xf32> to vector<16x32xf32>
    %25 = arith.mulf %15, %24 : vector<16x32xf32>
    %26 = vector.broadcast %8 : vector<1x32xf32> to vector<16x32xf32>
    %27 = arith.mulf %25, %26 : vector<16x32xf32>
    %28 = vector.broadcast %9 : vector<1x32xf32> to vector<16x32xf32>
    %29 = arith.addf %27, %28 : vector<16x32xf32>
    %30 = arith.truncf %29 : vector<16x32xf32> to vector<16x32xbf16>
    %c0_16 = arith.constant 0 : index
    %c0_17 = arith.constant 0 : index
    %31 = vector.load %arg7[%c0_16, %c0_17] : memref<32x128xbf16, #tpu.memory_space<vmem>>, vector<32x128xbf16>
    %cst_18 = arith.constant dense<0.000000e+00> : vector<16x128xf32>
    %32 = tpu.matmul %30, %31, %cst_18 {dimension_numbers = #tpu.dot_dimension_numbers<[1], [0], [0], [1], [0, 0, 1, 1], [], []>} : vector<16x32xbf16>, vector<32x128xbf16>, vector<16x128xf32> -> vector<16x128xf32>
    %c0_19 = arith.constant 0 : index
    %c0_20 = arith.constant 0 : index
    %33 = vector.load %arg8[%c0_19, %c0_20] : memref<1x128xf32, #tpu.memory_space<vmem>>, vector<1x128xf32>
    %34 = vector.broadcast %33 : vector<1x128xf32> to vector<16x128xf32>
    %35 = arith.addf %32, %34 : vector<16x128xf32>
    %cst_21 = arith.constant 5.000000e-01 : f32
    %36 = vector.broadcast %cst_21 : f32 to vector<16x128xf32>
    %37 = arith.mulf %36, %35 : vector<16x128xf32>
    %cst_22 = arith.constant 0.707106769 : f32
    %38 = vector.broadcast %cst_22 : f32 to vector<16x128xf32>
    %39 = arith.mulf %35, %38 : vector<16x128xf32>
    %40 = math.erf %39 : vector<16x128xf32>
    %cst_23 = arith.constant 1.000000e+00 : f32
    %41 = vector.broadcast %cst_23 : f32 to vector<16x128xf32>
    %42 = arith.addf %41, %40 : vector<16x128xf32>
    %43 = arith.mulf %37, %42 : vector<16x128xf32>
    %44 = arith.truncf %43 : vector<16x128xf32> to vector<16x128xbf16>
    %c0_24 = arith.constant 0 : index
    %c0_25 = arith.constant 0 : index
    %45 = vector.load %arg9[%c0_24, %c0_25] : memref<128x32xbf16, #tpu.memory_space<vmem>>, vector<128x32xbf16>
    %cst_26 = arith.constant dense<0.000000e+00> : vector<16x32xf32>
    %46 = tpu.matmul %44, %45, %cst_26 {dimension_numbers = #tpu.dot_dimension_numbers<[1], [0], [0], [1], [0, 0, 1, 1], [], []>} : vector<16x128xbf16>, vector<128x32xbf16>, vector<16x32xf32> -> vector<16x32xf32>
    %c0_27 = arith.constant 0 : index
    %c0_28 = arith.constant 0 : index
    %47 = vector.load %arg10[%c0_27, %c0_28] : memref<1x32xf32, #tpu.memory_space<vmem>>, vector<1x32xf32>
    %48 = vector.broadcast %47 : vector<1x32xf32> to vector<16x32xf32>
    %49 = arith.addf %46, %48 : vector<16x32xf32>
    %50 = arith.addf %7, %49 : vector<16x32xf32>
    %c0_29 = arith.constant 0 : index
    %c0_30 = arith.constant 0 : index
    %51 = vector.load %arg11[%c0_29, %c0_30] : memref<16x32xf32, #tpu.memory_space<vmem>>, vector<16x32xf32>
    tpu.vector_store %arg11[%c0_29, %c0_30], %50 {strides = array<i32>} : memref<16x32xf32, #tpu.memory_space<vmem>>, vector<16x32xf32>,
    return
  }
  func.func @transform_0(%arg0: i32) -> (i32, i32) {
    %c0_i32 = arith.constant 0 : i32
    %c0_i32_0 = arith.constant 0 : i32
    return %arg0, %c0_i32 : i32, i32
  }
  func.func @transform_1(%arg0: i32) -> (i32, i32) {
    %c0_i32 = arith.constant 0 : i32
    %c0_i32_0 = arith.constant 0 : i32
    return %arg0, %c0_i32 : i32, i32
  }
  func.func @transform_2(%arg0: i32) -> (i32, i32) {
    %c0_i32 = arith.constant 0 : i32
    %c0_i32_0 = arith.constant 0 : i32
    %c0_i32_1 = arith.constant 0 : i32
    return %c0_i32, %c0_i32_0 : i32, i32
  }
  func.func @transform_3(%arg0: i32) -> (i32, i32) {
    %c0_i32 = arith.constant 0 : i32
    %c0_i32_0 = arith.constant 0 : i32
    %c0_i32_1 = arith.constant 0 : i32
    return %c0_i32, %c0_i32_0 : i32, i32
  }
  func.func @transform_4(%arg0: i32) -> (i32, i32) {
    %c0_i32 = arith.constant 0 : i32
    %c0_i32_0 = arith.constant 0 : i32
    %c0_i32_1 = arith.constant 0 : i32
    return %c0_i32, %c0_i32_0 : i32, i32
  }
  func.func @transform_5(%arg0: i32) -> (i32, i32) {
    %c0_i32 = arith.constant 0 : i32
    %c0_i32_0 = arith.constant 0 : i32
    %c0_i32_1 = arith.constant 0 : i32
    return %c0_i32, %c0_i32_0 : i32, i32
  }
  func.func @transform_6(%arg0: i32) -> (i32, i32) {
    %c0_i32 = arith.constant 0 : i32
    %c0_i32_0 = arith.constant 0 : i32
    %c0_i32_1 = arith.constant 0 : i32
    return %c0_i32, %c0_i32_0 : i32, i32
  }
  func.func @transform_7(%arg0: i32) -> (i32, i32) {
    %c0_i32 = arith.constant 0 : i32
    %c0_i32_0 = arith.constant 0 : i32
    %c0_i32_1 = arith.constant 0 : i32
    return %c0_i32, %c0_i32_0 : i32, i32
  }
  func.func @transform_8(%arg0: i32) -> (i32, i32) {
    %c0_i32 = arith.constant 0 : i32
    %c0_i32_0 = arith.constant 0 : i32
    %c0_i32_1 = arith.constant 0 : i32
    return %c0_i32, %c0_i32_0 : i32, i32
  }
  func.func @transform_9(%arg0: i32) -> (i32, i32) {
    %c0_i32 = arith.constant 0 : i32
    %c0_i32_0 = arith.constant 0 : i32
    %c0_i32_1 = arith.constant 0 : i32
    return %c0_i32, %c0_i32_0 : i32, i32
  }
  func.func @transform_10(%arg0: i32) -> (i32, i32) {
    %c0_i32 = arith.constant 0 : i32
    %c0_i32_0 = arith.constant 0 : i32
    return %arg0, %c0_i32 : i32, i32
  }
}

module attributes {stable_mosaic.version = 11 : i64} {
  func.func @_ln_kernel(%arg0: i32, %arg1: memref<16x32xf32, #tpu.memory_space<vmem>>, %arg2: memref<1x32xf32, #tpu.memory_space<vmem>>, %arg3: memref<1x32xf32, #tpu.memory_space<vmem>>, %arg4: memref<16x32xf32, #tpu.memory_space<vmem>>) attributes {dimension_semantics = [#tpu.dimension_semantics<parallel>], iteration_bounds = array<i64: 1>, scalar_prefetch = 0 : i64, scratch_operands = 0 : i64, tpu.core_type = #tpu.core_type<tc>, window_params = [{transform_indices = @transform_0, window_bounds = array<i64: 16, 32>}, {pipeline_mode = #tpu.pipeline_mode<synchronous>, transform_indices = @transform_1, window_bounds = array<i64: 1, 32>}, {pipeline_mode = #tpu.pipeline_mode<synchronous>, transform_indices = @transform_2, window_bounds = array<i64: 1, 32>}, {transform_indices = @transform_3, window_bounds = array<i64: 16, 32>}]} {
    %c0 = arith.constant 0 : index
    %c0_0 = arith.constant 0 : index
    %0 = vector.load %arg1[%c0, %c0_0] : memref<16x32xf32, #tpu.memory_space<vmem>>, vector<16x32xf32>
    %c0_1 = arith.constant 0 : index
    %c0_2 = arith.constant 0 : index
    %1 = vector.load %arg2[%c0_1, %c0_2] : memref<1x32xf32, #tpu.memory_space<vmem>>, vector<1x32xf32>
    %c0_3 = arith.constant 0 : index
    %c0_4 = arith.constant 0 : index
    %2 = vector.load %arg3[%c0_3, %c0_4] : memref<1x32xf32, #tpu.memory_space<vmem>>, vector<1x32xf32>
    %cst = arith.constant dense<0.000000e+00> : vector<16xf32>
    %3 = vector.multi_reduction <add>, %0, %cst [1] : vector<16x32xf32> to vector<16xf32>
    %4 = vector.shape_cast %3 : vector<16xf32> to vector<16x1xf32>
    %cst_5 = arith.constant 3.200000e+01 : f32
    %5 = vector.broadcast %cst_5 : f32 to vector<16x1xf32>
    %6 = arith.divf %4, %5 : vector<16x1xf32>
    %7 = vector.broadcast %6 : vector<16x1xf32> to vector<16x32xf32>
    %8 = arith.subf %0, %7 : vector<16x32xf32>
    %9 = arith.mulf %8, %8 : vector<16x32xf32>
    %cst_6 = arith.constant dense<0.000000e+00> : vector<16xf32>
    %10 = vector.multi_reduction <add>, %9, %cst_6 [1] : vector<16x32xf32> to vector<16xf32>
    %11 = vector.shape_cast %10 : vector<16xf32> to vector<16x1xf32>
    %cst_7 = arith.constant 3.200000e+01 : f32
    %12 = vector.broadcast %cst_7 : f32 to vector<16x1xf32>
    %13 = arith.divf %11, %12 : vector<16x1xf32>
    %cst_8 = arith.constant 9.99999997E-7 : f32
    %14 = vector.broadcast %cst_8 : f32 to vector<16x1xf32>
    %15 = arith.addf %13, %14 : vector<16x1xf32>
    %16 = math.rsqrt %15 : vector<16x1xf32>
    %17 = vector.broadcast %16 : vector<16x1xf32> to vector<16x32xf32>
    %18 = arith.mulf %8, %17 : vector<16x32xf32>
    %19 = vector.broadcast %1 : vector<1x32xf32> to vector<16x32xf32>
    %20 = arith.mulf %18, %19 : vector<16x32xf32>
    %21 = vector.broadcast %2 : vector<1x32xf32> to vector<16x32xf32>
    %22 = arith.addf %20, %21 : vector<16x32xf32>
    %c0_9 = arith.constant 0 : index
    %c0_10 = arith.constant 0 : index
    %23 = vector.load %arg4[%c0_9, %c0_10] : memref<16x32xf32, #tpu.memory_space<vmem>>, vector<16x32xf32>
    tpu.vector_store %arg4[%c0_9, %c0_10], %22 {strides = array<i32>} : memref<16x32xf32, #tpu.memory_space<vmem>>, vector<16x32xf32>,
    return
  }
  func.func @transform_0(%arg0: i32) -> (i32, i32) {
    %c0_i32 = arith.constant 0 : i32
    %c0_i32_0 = arith.constant 0 : i32
    return %arg0, %c0_i32 : i32, i32
  }
  func.func @transform_1(%arg0: i32) -> (i32, i32) {
    %c0_i32 = arith.constant 0 : i32
    %c0_i32_0 = arith.constant 0 : i32
    %c0_i32_1 = arith.constant 0 : i32
    return %c0_i32, %c0_i32_0 : i32, i32
  }
  func.func @transform_2(%arg0: i32) -> (i32, i32) {
    %c0_i32 = arith.constant 0 : i32
    %c0_i32_0 = arith.constant 0 : i32
    %c0_i32_1 = arith.constant 0 : i32
    return %c0_i32, %c0_i32_0 : i32, i32
  }
  func.func @transform_3(%arg0: i32) -> (i32, i32) {
    %c0_i32 = arith.constant 0 : i32
    %c0_i32_0 = arith.constant 0 : i32
    return %arg0, %c0_i32 : i32, i32
  }
}

</mosaic_0001>

<bundles_post_ra>
// kernel: encoder_forward.7
= control target key start
LH: loop header
LB: loop body
LE: loop exit
PB: predicated region body
PF: predicated region fallthrough
CT: control target
= control target key end

     0   :  { %vm25_vm0 = vcmask 261120   ;;  %v181_v14 = vmov 0.0   ;;  %vm182_vm1 = vmmov 0   ;;  %vm145_vm2 = vcmask 781312   ;;  %s245_s0 = inlined_call_operand.vmem [shape: f32[16,32], index: 0, kind: input, shape index: {}]   ;;  %s246_s3 = inlined_call_operand.vmem [shape: bf16[32,96], index: 3, kind: input, shape index: {}]   ;;  %s247_s1 = inlined_call_operand.vmem [shape: f32[1,32], index: 1, kind: input, shape index: {}]   ;;  %s248_s2 = inlined_call_operand.vmem [shape: f32[1,32], index: 2, kind: input, shape index: {}]   ;;  %s249_s4 = inlined_call_operand.vmem [shape: f32[1,96], index: 4, kind: input, shape index: {}]   ;;  %s250_s5 = inlined_call_operand.vmem [shape: bf16[16,96], index: 5, kind: output, shape index: {}]  }
   0x1   :  { %v21_v0 = vld [vmem:[%s245_s0] sm:$0xff]  ;;  %v22_v1 = vld [vmem:[%s245_s0 + $0x8] sm:$0xff]  ;;  %165 = vmatprep.subr.bf16.mxu0 %v181_v14  ;;  %169 = vmatprep.mubr.msk.bf16.mxu0 %vm182_vm1, %v181_v14 }
   0x2   :  { %v26_v2 = vsel %vm25_vm0, %v21_v0, 0.0  ;;  %v29_v3 = vsel %vm25_vm0, %v22_v1, 0.0  ;;  %v175_v15 = vld [vmem:[%s246_s3 + $0x8] sm:$0xff]   ;;  %v176_v16 = vld [vmem:[%s246_s3] sm:$0xff]  }
   0x3   :  { %27 = vadd.xlane.f32.xlu0 %v26_v2  ;;  %166 = vmatpush3.bf16.msra.mxu0 %v175_v15  ;;  %v152_v25 = vld [vmem:[%s247_s1] ss:$0 sm:$0xff] }
   0x4   :  { %167 = vmatprep.subr.bf16.mxu0 %v181_v14  ;;  %v153_v29 = vld [vmem:[%s248_s2] ss:$0 sm:$0xff] }
   0x5   :  { %v154_v34 = vld [vmem:[%s249_s4] ss:$0 sm:$0xff] }
   0x7   :  { %30 = vadd.xlane.f32.xlu0 %v29_v3  ;;  %168 = vmatpush3.bf16.msra.mxu0 %v176_v16 }
  0x8c   :  { %v28_v4 = vpop.xlane.xlu0 %27 }
  0x8d   :  { %v33_v5 = vmul.f32 0.03125, %v28_v4 }
  0x8f   :  { %v35_v6 = vsub.f32 %v21_v0, %v33_v5 }
  0x90   :  { %v31_v7 = vpop.xlane.xlu0 %30 }
  0x91   :  { %v34_v8 = vmul.f32 0.03125, %v31_v7  ;;  %v37_v9 = vmul.f32 %v35_v6, %v35_v6 }
  0x93   :  { %v36_v10 = vsub.f32 %v22_v1, %v34_v8  ;;  %v39_v11 = vsel %vm25_vm0, %v37_v9, 0.0 }
  0x94   :  { %40 = vadd.xlane.f32.xlu1 %v39_v11 }
  0x95   :  { %v38_v12 = vmul.f32 %v36_v10, %v36_v10 }
  0x97   :  { %v42_v13 = vsel %vm25_vm0, %v38_v12, 0.0 }
  0x98   :  { %43 = vadd.xlane.f32.xlu1 %v42_v13 }
 0x11d   :  { %v41_v17 = vpop.xlane.xlu1 %40 }
 0x11e   :  { %v45_v18 = vmul.f32 0.03125, %v41_v17 }
 0x120   :  { %v47_v19 = vadd.f32 1e-06, %v45_v18 }
 0x121   :  { %v44_v20 = vpop.xlane.xlu1 %43 }
 0x122   :  { %177 = vrsqrt.f32 %v47_v19  ;;  %v46_v21 = vmul.f32 0.03125, %v44_v20 }
 0x124   :  { %v48_v22 = vadd.f32 1e-06, %v46_v21 }
 0x126   :  { %179 = vrsqrt.f32 %v48_v22 }
 0x12f   :  { %v178_v23 = vpop.eup %177 }
 0x130   :  { %v51_v24 = vmul.f32 %v178_v23, %v35_v6 }
 0x132   :  { %v59_v28 = vmul.f32 %v152_v25, %v51_v24 }
 0x133   :  { %v180_v26 = vpop.eup %179 }
 0x134   :  { %v52_v27 = vmul.f32 %v180_v26, %v36_v10  ;;  %v67_v31 = vadd.f32 %v153_v29, %v59_v28 }
 0x136   :  { %v60_v30 = vmul.f32 %v152_v25, %v52_v27 }
 0x138   :  { %v68_v32 = vadd.f32 %v153_v29, %v60_v30 }
 0x13a   :  { %v69_v33 = vpack.c.bf16 %v68_v32, %v67_v31 }
 0x13c   :  { %170 = vmatmul.mubr.msk.bf16.vlgmr.msra.gmra.mxu0 %vm25_vm0, %v69_v33 }
 0x1fc   :  { %v130_v35 = vpop.f32.mrf.mxu0 }
 0x1fd   :  { %v131_v36 = vadd.f32 %v154_v34, %v130_v35 }
 0x1fe   :  { %v171_v37 = vpop.f32.mrf.mxu0 }
 0x1ff   :  { %v160_v38 = vpack.c.bf16 %v131_v36, %v131_v36 }
 0x200   :  { %v133_v39 = vpop.f32.mrf.mxu0 }
 0x201   :  { %146 = vst.msk [vmem:[%s250_s5] sm:$0xf] %vm145_vm2, %v160_v38  ;;  %v134_v40 = vadd.f32 %v154_v34, %v133_v39 }
 0x202   :  { %v172_v41 = vpop.f32.mrf.mxu0 }
 0x203   :  { %v161_v42 = vpack.c.bf16 %v134_v40, %v134_v40 }
 0x205   :  { %147 = vst.msk [vmem:[%s250_s5 + $0x4] sm:$0xf] %vm145_vm2, %v161_v42 }

// kernel: encoder_forward.8
= control target key start
LH: loop header
LB: loop body
LE: loop exit
PB: predicated region body
PF: predicated region fallthrough
CT: control target
= control target key end

     0   :  { %s977_s0 = inlined_call_operand.vmem [shape: bf16[2,4,8,8], index: 0, kind: input, shape index: {}]   ;;  %s978_s1 = inlined_call_operand.vmem [shape: bf16[2,4,8,8], index: 1, kind: input, shape index: {}]   ;;  %s979_s2 = inlined_call_operand.vmem [shape: bf16[2,4,8,8], index: 2, kind: input, shape index: {}]   ;;  %s980_s3 = inlined_call_operand.hbm [shape: f32[2,4,8,8], index: 3, kind: output, shape index: {0}]   ;;  %s981_s4 = inlined_call_operand.vmem [shape: bf16[2,4,8,8], index: 4, kind: output, shape index: {1}]  }
   0x1   :  { %982 = sst [smem:[#allocation5_spill]] %s977_s0 }
   0x2   :  { %983 = sst [smem:[#allocation6_spill]] %s978_s1 }
   0x3   :  { %10 = vsyncpa [#allocation3], 0 }
   0x4   :  { %12 = vsyncpa [#allocation3 + $0x1], 0  ;;  %s832_s15 = smov 0   ;;  %s834_s16 = smov 0  }
   0x5   :  { %s836_s17 = smov 0   ;;  %s838_s18 = smov 0  }
   0x6   :  { %s840_s19 = smov 0   ;;  %s842_s20 = smov 0  }
   0x7   :  { %s844_s21 = smov 0   ;;  %s846_s22 = smov 0  }
   0x8 LB: > { %s596_s23 = sadd.s32 4294967295, %s802_s22   ;;  %s597_s24 = sadd.s32 4294967294, %s802_s22   ;;  %s802_s22 = sphi %s846_s22, %s18_s22   ;;  %s798_s21 = sphi %s844_s21, %s994_s21   ;;  %s794_s20 = sphi %s842_s20, %s993_s20   ;;  %s790_s19 = sphi %s840_s19, %s992_s19   ;;  %s786_s18 = sphi %s838_s18, %s991_s18   ;;  %s782_s17 = sphi %s836_s17, %s990_s17   ;;  %s778_s16 = sphi %s834_s16, %s989_s16   ;;  %s774_s15 = sphi %s832_s15, %s988_s15  }
   0x9   : > { %s27_s25 = sadd.s32 1, %s794_s20  ;;  %s30_s26 = sadd.s32 1, %s798_s21 }
   0xa   : > { %p28_p0 = scmp.ge.s32.totalorder %s27_s25, 4  ;;  %p133_p1 = scmp.ne.s32.totalorder %s782_s17, %s778_s16 }
   0xb   : > { %p134_p2 = scmp.eq.s32.totalorder %s596_s23, 7  ;;  %p139_p5 = scmp.ne.s32.totalorder %s778_s16, %s774_s15 }
   0xc   : > { %s996_s25 = smov (%p28_p0, %s27_s25), 0  ;;  %s998_s26 = smov (!%p28_p0, %s30_s26), %s798_s21 }
   0xd   : > { %s119_s27 = ssub.s32 %s794_s20, %s996_s25  ;;  %p883_p3 = por %p134_p2, %p133_p1 }
   0xe   : > { %p32_p4 = scmp.ge.s32.totalorder %s998_s26, 2  ;;  %p140_p6 = scmp.eq.s32.totalorder %s597_s24, 7 }
   0xf   : > { %p600_p7 = scmp.ge.s32.totalorder %s802_s22, 1  ;;  %p219_p9 = scmp.lt.s32.totalorder %s802_s22, 9 }
  0x10   : > { %s1000_s26 = smov (%p32_p4, %s998_s26), 0  ;;  %p892_p8 = por %p140_p6, %p139_p5 }
  0x11   : > { %s118_s30 = ssub.s32 %s798_s21, %s1000_s26  ;;  %s123_s5 = sadd.s32 1, %s782_s17 }
  0x12   : > { %s120_s6 = sor.u32 %s119_s27, %s118_s30  ;;  %p220_p10 = pnand %p600_p7, %p219_p9 }
  0x13   : > { %p121_p11 = scmp.eq.s32.totalorder %s120_s6, 0  ;;  %p272_p12 = scmp.lt.s32.totalorder (!%p220_p10), %s790_s19, 1 }
  0x14   : > { %223 = sbr.rel (%p220_p10) target bundleno = 748 (0x2ec), region = 32  ;;  %p274_p13 = scmp.lt.s32.totalorder (!%p220_p10), %s786_s18, 3 }
  0x15   : > { %s901_s7 = scalar_select %p121_p11, %s782_s17, %s123_s5  }
  0x16   : > { %s986_s1 = sld [smem:[#allocation6_spill]] (!%p220_p10)  ;;  %s613_s13 = sshll.u32 (!%p220_p10), %s790_s19, 2 }
  0x17   : > { %s987_s0 = sld [smem:[#allocation5_spill]] (!%p220_p10)  ;;  %s439_s14 = sadd.s32 (!%p220_p10), %s786_s18, %s613_s13 }
  0x19   : > { %v804_v0 = vmov 0.0   ;;  %vm805_vm0 = vmmov 0   ;;  %s273_s8 = scalar_select %p272_p12, %s790_s19, 1  ;;  %vm308_vm1 = vcmask 64512   ;;  %vm372_vm2 = vcmask 1043456  }
  0x1a   : > { %621 = vmatprep.subr.bf16.mxu0 %v804_v0  ;;  %623 = vmatprep.mubr.msk.bf16.mxu0 %vm805_vm0, %v804_v0  ;;  %s275_s9 = scalar_select %p274_p13, %s786_s18, 3 }
  0x1b   : > { %627 = vmatprep.subr.bf16.mxu1 %v804_v0  ;;  %629 = vmatprep.mubr.msk.bf16.mxu1 %vm805_vm0, %v804_v0  ;;  %s602_s10 = sshll.u32 %s273_s8, 2 }
  0x1c   : > { %s277_s11 = sadd.s32 %s602_s10, %s275_s9  ;;  %s259_s9 = sand.u32 1, %s778_s16  }
  0x1d   : > { %s907_s12 = sshll.u32 %s277_s11, 2  ;;  %s601_s10 = sshll.u32 %s259_s9, 3 }
  0x1e   : > { %s287_s23 = scalar_lea.vmem %s986_s1, %s907_s12  ;;  %s279_s30 = scalar_lea.vmem %s987_s0, %s907_s12 }
  0x1f   : > { %v306_v1 = vld [vmem:[%s287_s23] sm:$0xf]  ;;  %s295_s8 = scalar_lea.vmem %s979_s2, %s907_s12  ;;  %s261_s11 = scalar_lea.vmem [#allocation2], %s601_s10 }
  0x20   : > { %v313_v2 = vsel %vm308_vm1, %v306_v1, 0  ;;  %v305_v3 = vld [vmem:[%s279_s30] sm:$0xf]  ;;  %s614_s23 = sshll.u32 %s439_s14, 7  ;;  %s443_s24 = sshll.u32 %s261_s11, 4  ;;  %s444_s24 = int_to_ptr.vmem [resolvable:$true] %s443_s24 }
  0x21   : > { %622 = vmatpush3.bf16.xpose.msra.mxu0 %v313_v2  ;;  %v307_v15 = vld [vmem:[%s295_s8] sm:$0xf]  ;;  %s441_s5 = scalar_lea.hbm %s980_s3, %s614_s23  ;;  %s420_s6 = scalar_lea.sflag [#allocation3], %s259_s9 }
  0x22   : > { %v374_v16 = vsel %vm372_vm2, %v307_v15, 0  ;;  %s710_s8 = scalar_lea.vmem %s444_s24, 128  ;;  %s806_s10 = smov [#allocation2]  }
  0x23   : > { %628 = vmatpush3.bf16.msra.mxu1 %v374_v16  ;;  %p711_p0 = scmp.ne.s32.totalorder %s444_s24, %s710_s8  ;;  %s714_s0 = sshll.u32 %s806_s10, 4  ;;  %s715_s0 = int_to_ptr.vmem [resolvable:$false] %s714_s0 }
  0x24   : > { %s716_s1 = scalar_lea.vmem %s715_s0, 256  ;;  %p717_p4 = scmp.lt.s32.totalorder %s444_s24, %s715_s0 }
  0x25   : > { %p712_p1 = pnand %p711_p0, %p883_p3  ;;  %p718_p5 = scmp.lt.s32.totalorder %s716_s1, %s710_s8 }
  0x27   : > { %p713_p2 = pneg %p712_p1  ;;  %p719_p6 = por %p718_p5, %p717_p4 }
  0x28   : > { %624 = vmatmul.mubr.msk.bf16.vlgmr.msra.gmra.mxu0 %vm308_vm1, %v305_v3 }
  0x29   : > { %p720_p7 = pnand %p719_p6, %p713_p2 }
  0xe8   : > { %v349_v4 = vpop.f32.mrf.mxu0 }
  0xe9   : > { %v355_v5 = vmul.f32 0.35355338, %v349_v4 }
  0xea   : > { %v625_v6 = vpop.f32.mrf.mxu0 }
  0xeb   : > { %v356_v7 = vsel %vm308_vm1, %v355_v5, -inf }
  0xec   : > { %357 = vmax.xlane.f32.xlu0 %v356_v7  ;;  %v352_v8 = vpop.f32.mrf.mxu0 }
  0xee   : > { %v626_v9 = vpop.f32.mrf.mxu0 }
 0x175   : > { %v358_v10 = vpop.xlane.xlu0 %357 }
 0x176   : > { %v359_v11 = vsub.f32 %v355_v5, %v358_v10 }
 0x178   : > { %v360_v12 = vmul.f32 1.442695, %v359_v11 }
 0x17a   : > { %706 = vpow2.f32 %v360_v12 }
 0x187   : > { %v707_v13 = vpop.eup %706 }
 0x188   : > { %v362_v14 = vsel %vm308_vm1, %v707_v13, 0.0 }
 0x189   : > { %363 = vadd.xlane.f32.xlu0 %v362_v14 }
 0x212   : > { %v364_v17 = vpop.xlane.xlu0 %363 }
 0x213   : > { %708 = vrcp.f32 %v364_v17 }
 0x220   : > { %v709_v18 = vpop.eup %708 }
 0x221   : > { %v366_v19 = vmul.f32 %v709_v18, %v707_v13 }
 0x223   : > { %v368_v20 = vpack.c.bf16 %v366_v19, %v366_v19  ;;  %367 = vst.msk [vmem:[%s261_s11] sm:$0xff] %vm308_vm1, %v366_v19 }
 0x225   : > { %630 = vmatmul.mubr.msk.bf16.vlgmr.msra.gmra.mxu1 %vm308_vm1, %v368_v20 }
 0x226   : > { %723 = shalt.err (!%p720_p7)
}
 0x227   : > { %s724_s18 = scalar_lea.hbm %s441_s5, 128  ;;  %s728_s11 = scalar_lea.hbm %s980_s3, 1024 }
 0x228   : > { %p725_p9 = scmp.ne.s32.totalorder %s441_s5, %s724_s18  ;;  %p729_p12 = scmp.lt.s32.totalorder %s441_s5, %s980_s3 }
 0x229   : > { %p730_p13 = scmp.lt.s32.totalorder %s728_s11, %s724_s18 }
 0x22a   : > { %p726_p10 = pnand %p725_p9, %p883_p3 }
 0x22b   : > { %p731_p0 = por %p730_p13, %p729_p12 }
 0x22c   : > { %p727_p11 = pneg %p726_p10 }
 0x22e   : > { %p732_p1 = pnand %p731_p0, %p727_p11 }
 0x230   : > { %735 = shalt.err (!%p732_p1)
}
 0x231   : > { %633 = dma.vmem_to_hbm [thread:$0]  (%p883_p3), %s444_s24, 128, %s441_s5, %s420_s6   ;;  %vm417_vm3 = vcmask 60416  }
 0x232   : > { %s303_s23 = scalar_lea.vmem %s981_s4, %s907_s12 }
 0x2e5   : > { %v410_v21 = vpop.f32.mrf.mxu1 }
 0x2e6   : > { %v416_v22 = vpack.c.bf16 %v410_v21, %v410_v21 }
 0x2e7   : > { %v631_v23 = vpop.f32.mrf.mxu1 }
 0x2e8   : > { %418 = vst.msk [vmem:[%s303_s23] sm:$0xf] %vm417_vm3, %v416_v22 }
 0x2e9   : > { %v413_v24 = vpop.f32.mrf.mxu1 }
 0x2eb   : > { %v632_v25 = vpop.f32.mrf.mxu1 }
 0x2ec PF: > { %p639_p2 = scmp.ge.s32.totalorder %s802_s22, 2  ;;  %s458_s27 = sand.u32 1, %s774_s15  }
 0x2ed   : > { %s459_s28 = scalar_lea.sflag [#allocation3], %s458_s27 }
 0x2ee   : > { %p636_p4 = pnand %p639_p2, %p892_p8 }
 0x2f0   : > { %p637_p3 = pneg %p636_p4 }
 0x2f2   : > { %769 = dma.done.wait (%p637_p3), %s459_s28, 128  }
 0x2f3   : > { %771 = vsyncadd (%p637_p3), %s459_s28, 4294967168  ;;  %s18_s22 = sadd.s32 1, %s802_s22   ;;  %s988_s15 = smov %s778_s16 }
 0x2f4   : > { %p15_p5 = scmp.ge.s32.totalorder %s18_s22, 10   ;;  %s989_s16 = smov %s782_s17 }
 0x2f5   : > { %s990_s17 = smov %s901_s7  ;;  %s991_s18 = smov %s794_s20 }
 0x2f6   : > { %s992_s19 = smov %s798_s21  ;;  %s993_s20 = smov %s996_s25 }
 0x2f7   : > { %s994_s21 = smov %s1000_s26  ;;  %17 = sbr.rel (!%p15_p5) target bundleno = 8 (0x8), region = 85 }
 0x2fc   :  { %475 = vsyncpa [#allocation3], 1 }
 0x2fd   :  { %477 = vsyncpa [#allocation3 + $0x1], 1 }

// kernel: encoder_forward.13
= control target key start
LH: loop header
LB: loop body
LE: loop exit
PB: predicated region body
PF: predicated region fallthrough
CT: control target
= control target key end

     0   :  { %vm19_vm0 = vcmask 261120   ;;  %s156_s0 = inlined_call_operand.vmem [shape: f32[16,32], index: 0, kind: input, shape index: {}]   ;;  %s157_s1 = inlined_call_operand.vmem [shape: f32[1,32], index: 1, kind: input, shape index: {}]   ;;  %s158_s2 = inlined_call_operand.vmem [shape: f32[1,32], index: 2, kind: input, shape index: {}]   ;;  %s159_s3 = inlined_call_operand.hbm [shape: f32[16,32], index: 3, kind: output, shape index: {}]  }
   0x1   :  { %v15_v0 = vld [vmem:[%s156_s0] sm:$0xff]  ;;  %v16_v1 = vld [vmem:[%s156_s0 + $0x8] sm:$0xff] }
   0x2   :  { %8 = vsyncpa [#allocation3], 0  ;;  %v20_v2 = vsel %vm19_vm0, %v15_v0, 0.0  ;;  %v23_v3 = vsel %vm19_vm0, %v16_v1, 0.0  ;;  %v81_v21 = vld [vmem:[%s157_s1] ss:$0 sm:$0xff] }
   0x3   :  { %21 = vadd.xlane.f32.xlu0 %v20_v2  ;;  %v82_v23 = vld [vmem:[%s158_s2] ss:$0 sm:$0xff]  ;;  %s112_s19 = smov [#allocation2]  }
   0x4   :  { %s70_s20 = sshll.u32 %s112_s19, 4  ;;  %s71_s20 = int_to_ptr.vmem [resolvable:$true] %s70_s20 }
   0x5   :  { %s90_s21 = scalar_lea.vmem %s71_s20, 256  ;;  %p95_p1 = scmp.lt.s32.totalorder %s71_s20, %s71_s20 }
   0x6   :  { %p91_p0 = scmp.ne.s32.totalorder %s71_s20, %s90_s21  ;;  %p96_p2 = scmp.lt.s32.totalorder %s90_s21, %s90_s21 }
   0x7   :  { %24 = vadd.xlane.f32.xlu0 %v23_v3 }
   0x8   :  { %p97_p3 = por %p96_p2, %p95_p1 }
   0xa   :  { %p98_p4 = pnand %p97_p3, %p91_p0 }
  0x8c   :  { %v22_v4 = vpop.xlane.xlu0 %21 }
  0x8d   :  { %v27_v5 = vmul.f32 0.03125, %v22_v4 }
  0x8f   :  { %v29_v6 = vsub.f32 %v15_v0, %v27_v5 }
  0x90   :  { %v25_v7 = vpop.xlane.xlu0 %24 }
  0x91   :  { %v28_v8 = vmul.f32 0.03125, %v25_v7  ;;  %v31_v9 = vmul.f32 %v29_v6, %v29_v6 }
  0x93   :  { %v30_v10 = vsub.f32 %v16_v1, %v28_v8  ;;  %v33_v11 = vsel %vm19_vm0, %v31_v9, 0.0 }
  0x94   :  { %34 = vadd.xlane.f32.xlu1 %v33_v11 }
  0x95   :  { %v32_v12 = vmul.f32 %v30_v10, %v30_v10 }
  0x97   :  { %v36_v13 = vsel %vm19_vm0, %v32_v12, 0.0 }
  0x98   :  { %37 = vadd.xlane.f32.xlu1 %v36_v13 }
 0x11d   :  { %v35_v14 = vpop.xlane.xlu1 %34 }
 0x11e   :  { %v39_v15 = vmul.f32 0.03125, %v35_v14 }
 0x120   :  { %v41_v16 = vadd.f32 1e-06, %v39_v15 }
 0x121   :  { %v38_v17 = vpop.xlane.xlu1 %37 }
 0x122   :  { %86 = vrsqrt.f32 %v41_v16  ;;  %v40_v18 = vmul.f32 0.03125, %v38_v17 }
 0x124   :  { %v42_v19 = vadd.f32 1e-06, %v40_v18 }
 0x126   :  { %88 = vrsqrt.f32 %v42_v19 }
 0x12f   :  { %v87_v20 = vpop.eup %86 }
 0x130   :  { %v45_v22 = vmul.f32 %v87_v20, %v29_v6 }
 0x132   :  { %v53_v24 = vmul.f32 %v81_v21, %v45_v22 }
 0x133   :  { %v89_v25 = vpop.eup %88 }
 0x134   :  { %v46_v26 = vmul.f32 %v89_v25, %v30_v10  ;;  %v61_v27 = vadd.f32 %v82_v23, %v53_v24 }
 0x136   :  { %v54_v28 = vmul.f32 %v81_v21, %v46_v26  ;;  %63 = vst.msk [vmem:[#allocation2] sm:$0xff] %vm19_vm0, %v61_v27 }
 0x138   :  { %v62_v29 = vadd.f32 %v82_v23, %v54_v28 }
 0x13a   :  { %64 = vst.msk [vmem:[#allocation2 + $0x8] sm:$0xff] %vm19_vm0, %v62_v29 }
 0x13b   :  { %101 = shalt.err (!%p98_p4)
}
 0x13c   :  { %s113_s1 = smov 128   ;;  %s114_s2 = smov 8  }
 0x13d   :  { %76 = dma.vmem_to_hbm [thread:$0]  %s71_s20, 256, %s159_s3, [#allocation3], %s113_s1, %s113_s1, %s114_s2  }
 0x13e   :  { %110 = dma.done.wait [#allocation3], 256  }
 0x13f   :  { %111 = vsyncadd [#allocation3], 4294967040 }
 0x140   :  { %80 = vsyncpa [#allocation3], 1 }

// kernel: encoder_forward.9
= control target key start
LH: loop header
LB: loop body
LE: loop exit
PB: predicated region body
PF: predicated region fallthrough
CT: control target
= control target key end

     0   :  { %v453_v0 = vmov 0.0   ;;  %vm454_vm0 = vmmov 0   ;;  %vm68_vm1 = vcmask 261120   ;;  %s609_s2 = inlined_call_operand.vmem [shape: bf16[32,32], index: 2, kind: input, shape index: {}]   ;;  %s610_s1 = inlined_call_operand.vmem [shape: bf16[16,32], index: 1, kind: input, shape index: {}]   ;;  %s611_s3 = inlined_call_operand.vmem [shape: f32[1,32], index: 3, kind: input, shape index: {}]   ;;  %s612_s0 = inlined_call_operand.vmem [shape: f32[16,32], index: 0, kind: input, shape index: {}]   ;;  %s613_s6 = inlined_call_operand.vmem [shape: bf16[32,128], index: 6, kind: input, shape index: {}]   ;;  %s614_s8 = inlined_call_operand.vmem [shape: bf16[128,32], index: 8, kind: input, shape index: {}]   ;;  %s615_s4 = inlined_call_operand.vmem [shape: f32[1,32], index: 4, kind: input, shape index: {}]   ;;  %s616_s5 = inlined_call_operand.vmem [shape: f32[1,32], index: 5, kind: input, shape index: {}]   ;;  %s617_s7 = inlined_call_operand.vmem [shape: f32[1,128], index: 7, kind: input, shape index: {}]   ;;  %s618_s9 = inlined_call_operand.vmem [shape: f32[1,32], index: 9, kind: input, shape index: {}]   ;;  %s619_s10 = inlined_call_operand.vmem [shape: f32[16,32], index: 10, kind: output, shape index: {}]  }
   0x1   :  { %394 = vmatprep.subr.bf16.mxu1 %v453_v0  ;;  %v432_v1 = vld [vmem:[%s609_s2 + $0x8] sm:$0xff]   ;;  %398 = vmatprep.mubr.msk.bf16.mxu1 %vm454_vm0, %v453_v0  ;;  %v433_v2 = vld [vmem:[%s609_s2] sm:$0xff]   ;;  %v437_v29 = vld [vmem:[%s614_s8 + $0x38] sm:$0xff]  }
   0x2   :  { %410 = vmatprep.subr.bf16.mxu0 %v453_v0  ;;  %426 = vmatprep.mubr.msk.bf16.mxu0 %vm454_vm0, %v453_v0  ;;  %v434_v3 = vld [vmem:[%s610_s1] sm:$0xff]   ;;  %v37_v10 = vld [vmem:[%s612_s0 + $0x8] sm:$0xff]  ;;  %v438_v47 = vld [vmem:[%s614_s8 + $0x30] sm:$0xff]  }
   0x3   :  { %395 = vmatpush3.bf16.msra.mxu1 %v432_v1  ;;  %v359_v4 = vld [vmem:[%s611_s3] ss:$0 sm:$0xff]  ;;  %v435_v27 = vld [vmem:[%s613_s6 + $0x8] sm:$0xff]   ;;  %411 = vmatpush3.bf16.msra.mxu0 %v437_v29  ;;  %v441_v50 = vld [vmem:[%s614_s8 + $0x18] sm:$0xff]  }
   0x4   :  { %396 = vmatprep.subr.bf16.mxu1 %v453_v0  ;;  %v36_v5 = vld [vmem:[%s612_s0] sm:$0xff]  ;;  %412 = vmatprep.subr.bf16.mxu0 %v453_v0  ;;  %v439_v48 = vld [vmem:[%s614_s8 + $0x28] sm:$0xff]   ;;  %v442_v51 = vld [vmem:[%s614_s8 + $0x10] sm:$0xff]  }
   0x5   :  { %v436_v28 = vld [vmem:[%s613_s6] sm:$0xff]   ;;  %v443_v52 = vld [vmem:[%s614_s8 + $0x8] sm:$0xff]  }
   0x6   :  { %v364_v38 = vld [vmem:[%s615_s4] ss:$0 sm:$0xff] }
   0x7   :  { %397 = vmatpush3.bf16.msra.mxu1 %v433_v2  ;;  %v365_v42 = vld [vmem:[%s616_s5] ss:$0 sm:$0xff]  ;;  %413 = vmatpush3.bf16.msra.mxu0 %v438_v47 }
   0x8   :  { %402 = vmatprep.subr.bf16.mxu1 %v453_v0  ;;  %414 = vmatprep.subr.bf16.mxu0 %v453_v0  ;;  %v440_v49 = vld [vmem:[%s614_s8 + $0x20] sm:$0xff]  }
   0x9   :  { %v444_v53 = vld [vmem:[%s614_s8] sm:$0xff]  }
   0xa   :  { %399 = vmatmul.mubr.msk.bf16.vlgmr.msra.gmra.mxu1 %vm68_vm1, %v434_v3  ;;  %v366_v54 = vld [vmem:[%s617_s7] ss:$0 sm:$0xff] }
   0xb   :  { %406 = vmatprep.mubr.msk.bf16.mxu1 %vm454_vm0, %v453_v0  ;;  %403 = vmatpush3.bf16.msra.mxu1 %v435_v27 }
   0xc   :  { %404 = vmatprep.subr.bf16.mxu1 %v453_v0  ;;  %415 = vmatpush3.bf16.msra.mxu0 %v439_v48 }
   0xd   :  { %416 = vmatprep.subr.bf16.mxu0 %v453_v0 }
   0xf   :  { %405 = vmatpush3.bf16.msra.mxu1 %v436_v28 }
  0x10   :  { %417 = vmatpush3.bf16.msra.mxu0 %v440_v49 }
  0x11   :  { %418 = vmatprep.subr.bf16.mxu0 %v453_v0 }
  0x14   :  { %419 = vmatpush3.bf16.msra.mxu0 %v441_v50 }
  0x15   :  { %420 = vmatprep.subr.bf16.mxu0 %v453_v0 }
  0x18   :  { %421 = vmatpush3.bf16.msra.mxu0 %v442_v51 }
  0x19   :  { %422 = vmatprep.subr.bf16.mxu0 %v453_v0 }
  0x1c   :  { %423 = vmatpush3.bf16.msra.mxu0 %v443_v52 }
  0x1d   :  { %424 = vmatprep.subr.bf16.mxu0 %v453_v0 }
  0x20   :  { %425 = vmatpush3.bf16.msra.mxu0 %v444_v53 }
  0xca   :  { %v106_v6 = vpop.f32.mrf.mxu1 }
  0xcb   :  { %v107_v7 = vadd.f32 %v359_v4, %v106_v6 }
  0xcc   :  { %v400_v8 = vpop.f32.mrf.mxu1 }
  0xcd   :  { %v533_v9 = vadd.f32 %v107_v7, %v36_v5  ;;  %v370_v8 = vld [vmem:[%s618_s9] ss:$0 sm:$0xff] }
  0xce   :  { %v109_v11 = vpop.f32.mrf.mxu1 }
  0xcf   :  { %v110_v12 = vadd.f32 %v359_v4, %v109_v11  ;;  %v117_v13 = vsel %vm68_vm1, %v533_v9, 0.0 }
  0xd0   :  { %v401_v14 = vpop.f32.mrf.mxu1  ;;  %118 = vadd.xlane.f32.xlu0 %v117_v13 }
  0xd1   :  { %v540_v15 = vadd.f32 %v110_v12, %v37_v10 }
  0xd3   :  { %v120_v16 = vsel %vm68_vm1, %v540_v15, 0.0 }
  0xd4   :  { %121 = vadd.xlane.f32.xlu0 %v120_v16 }
 0x159   :  { %v119_v17 = vpop.xlane.xlu0 %118 }
 0x15a   :  { %v124_v18 = vmul.f32 0.03125, %v119_v17 }
 0x15c   :  { %v126_v19 = vsub.f32 %v533_v9, %v124_v18 }
 0x15d   :  { %v122_v20 = vpop.xlane.xlu0 %121 }
 0x15e   :  { %v125_v21 = vmul.f32 0.03125, %v122_v20  ;;  %v128_v22 = vmul.f32 %v126_v19, %v126_v19 }
 0x160   :  { %v127_v23 = vsub.f32 %v540_v15, %v125_v21  ;;  %v130_v24 = vsel %vm68_vm1, %v128_v22, 0.0 }
 0x161   :  { %131 = vadd.xlane.f32.xlu1 %v130_v24 }
 0x162   :  { %v129_v25 = vmul.f32 %v127_v23, %v127_v23 }
 0x164   :  { %v133_v26 = vsel %vm68_vm1, %v129_v25, 0.0 }
 0x165   :  { %134 = vadd.xlane.f32.xlu1 %v133_v26 }
 0x1ea   :  { %v132_v30 = vpop.xlane.xlu1 %131 }
 0x1eb   :  { %v136_v31 = vmul.f32 0.03125, %v132_v30 }
 0x1ed   :  { %v138_v32 = vadd.f32 1e-06, %v136_v31 }
 0x1ee   :  { %v135_v33 = vpop.xlane.xlu1 %134 }
 0x1ef   :  { %445 = vrsqrt.f32 %v138_v32  ;;  %v137_v34 = vmul.f32 0.03125, %v135_v33 }
 0x1f1   :  { %v139_v35 = vadd.f32 1e-06, %v137_v34 }
 0x1f3   :  { %447 = vrsqrt.f32 %v139_v35 }
 0x1fc   :  { %v446_v36 = vpop.eup %445 }
 0x1fd   :  { %v142_v37 = vmul.f32 %v446_v36, %v126_v19 }
 0x1ff   :  { %v150_v41 = vmul.f32 %v364_v38, %v142_v37 }
 0x200   :  { %v448_v39 = vpop.eup %447 }
 0x201   :  { %v143_v40 = vmul.f32 %v448_v39, %v127_v23  ;;  %v158_v44 = vadd.f32 %v365_v42, %v150_v41 }
 0x203   :  { %v151_v43 = vmul.f32 %v364_v38, %v143_v40 }
 0x205   :  { %v159_v45 = vadd.f32 %v365_v42, %v151_v43 }
 0x207   :  { %v160_v46 = vpack.c.bf16 %v159_v45, %v158_v44 }
 0x209   :  { %407 = vmatmul.mubr.msk.bf16.vlgmr.msra.gmra.mxu1 %vm68_vm1, %v160_v46 }
 0x2c9   :  { %v221_v55 = vpop.f32.mrf.mxu1 }
 0x2ca   :  { %v222_v56 = vadd.f32 %v366_v54, %v221_v55 }
 0x2cb   :  { %v408_v57 = vpop.f32.mrf.mxu1 }
 0x2cc   :  { %v230_v58 = vmul.f32 0.70710677, %v222_v56  ;;  %v228_v2 = vmul.f32 0.5, %v222_v56 }
 0x2cd   :  { %v224_v59 = vpop.f32.mrf.mxu1 }
 0x2ce   :  { %449 = verf.f32 %v230_v58  ;;  %v225_v60 = vadd.f32 %v366_v54, %v224_v59 }
 0x2cf   :  { %v409_v61 = vpop.f32.mrf.mxu1 }
 0x2d0   :  { %v231_v62 = vmul.f32 0.70710677, %v225_v60  ;;  %v229_v3 = vmul.f32 0.5, %v225_v60 }
 0x2d2   :  { %451 = verf.f32 %v231_v62 }
 0x2db   :  { %v450_v63 = vpop.eup %449 }
 0x2dc   :  { %v234_v0 = vadd.f32 1.0, %v450_v63 }
 0x2de   :  { %v236_v5 = vmul.f32 %v234_v0, %v228_v2 }
 0x2df   :  { %v452_v1 = vpop.eup %451 }
 0x2e0   :  { %v235_v4 = vadd.f32 1.0, %v452_v1 }
 0x2e2   :  { %v237_v6 = vmul.f32 %v235_v4, %v229_v3 }
 0x2e4   :  { %v238_v7 = vpack.c.bf16 %v237_v6, %v236_v5 }
 0x2e6   :  { %427 = vmatmul.mubr.bf16.vlgmr.msra.gmra.mxu0 %v238_v7 }
 0x3a6   :  { %v344_v10 = vpop.f32.mrf.mxu0 }
 0x3a7   :  { %v345_v11 = vadd.f32 %v370_v8, %v344_v10 }
 0x3a8   :  { %v428_v12 = vpop.f32.mrf.mxu0 }
 0x3a9   :  { %v351_v13 = vadd.f32 %v345_v11, %v533_v9 }
 0x3aa   :  { %v347_v14 = vpop.f32.mrf.mxu0 }
 0x3ab   :  { %353 = vst.msk [vmem:[%s619_s10] sm:$0xff] %vm68_vm1, %v351_v13  ;;  %v348_v16 = vadd.f32 %v370_v8, %v347_v14 }
 0x3ac   :  { %v429_v17 = vpop.f32.mrf.mxu0 }
 0x3ad   :  { %v352_v18 = vadd.f32 %v348_v16, %v540_v15 }
 0x3af   :  { %354 = vst.msk [vmem:[%s619_s10 + $0x8] sm:$0xff] %vm68_vm1, %v352_v18 }

</bundles_post_ra>
